<compile_context>
chip_gen: v7x
topology: tpu7x:2x2x1
jax: 0.10.0
libtpu: 0.0.40
codegen_flags: <defaults>
</compile_context>

<pallas_src>
import functools

import numpy as np

import jax
import jax.numpy as jnp
from jax import lax
from jax.experimental import pallas as pl
from jax.experimental.pallas import tpu as pltpu


_OUT_LANES = 128  # lane-dense output width: [cls | decoded boxes | zero pad]


def _round_up(x, m):
    return ((x + m - 1) // m) * m


# ----------------------------------------------------------------------------
# Kernel 1: LearnedPositionalEncoding, emitted directly in (2F, h, w) layout,
# tiled over the channel axis so the per-step VMEM footprint stays small even
# at production BEV sizes (2F=256, h=w=200 would be ~40 MiB un-tiled).
#   channels [0, F)   : pos[c, y, x]     = col_embed[x, c]   (x-embed)
#   channels [F, 2F)  : pos[F + c, y, x] = row_embed[y, c]   (y-embed)
# Embedding tables are stored pre-transposed (feature-major) so no transposes
# or lane concats are needed — just a broadcast + store per channel tile.
# ----------------------------------------------------------------------------
def _pos_encoding_kernel(nfb, col_ref, row_ref, out_ref):
    tf, h, w = out_ref.shape
    i = pl.program_id(0)

    @pl.when(i < nfb)            # x-embed half: value depends on (feature, x)
    def _():
        out_ref[...] = jnp.broadcast_to(col_ref[...][:, None, :], (tf, h, w))

    @pl.when(i >= nfb)           # y-embed half: value depends on (feature, y)
    def _():
        out_ref[...] = jnp.broadcast_to(row_ref[...][:, :, None], (tf, h, w))


def learned_positional_encoding(col_embed_t, row_embed_t, bs, *, tf=None):
    """col_embed_t: (F, w), row_embed_t: (F, h) -> (bs, 2F, h, w) (NCHW)."""
    f, w = col_embed_t.shape
    h = row_embed_t.shape[1]
    if tf is None:
        tf = 8 if f % 8 == 0 else f      # 8-channel tiles keep blocks ~1 MiB at prod sizes
    assert f % tf == 0
    nfb = f // tf

    pos = pl.pallas_call(
        functools.partial(_pos_encoding_kernel, nfb),
        grid=(2 * nfb,),
        in_specs=[pl.BlockSpec((tf, w), lambda i: (jnp.minimum(i, nfb - 1), 0)),
                  pl.BlockSpec((tf, h), lambda i: (jnp.maximum(i - nfb, 0), 0))],
        out_specs=pl.BlockSpec((tf, h, w), lambda i: (i, 0, 0)),
        out_shape=jax.ShapeDtypeStruct((2 * f, h, w), row_embed_t.dtype),
        compiler_params=pltpu.CompilerParams(dimension_semantics=("arbitrary",)),
    )(col_embed_t, row_embed_t)
    # Broadcast over batch lazily; the per-batch copy is never materialized here
    # because the (stubbed) transformer is the only consumer.
    return jnp.broadcast_to(pos[None], (bs, 2 * f, h, w))


# ----------------------------------------------------------------------------
# Kernel 2: per-(decoder-level, token-tile) detection head
#   cls branch : (Linear -> LayerNorm -> ReLU) x 2 -> Linear(C)
#   reg branch : (Linear -> ReLU) x 2             -> Linear(code_size)
#   box decode : add precomputed inverse_sigmoid(reference), sigmoid, pc_range
# Layer 1 fused (shared input -> one MXU call, N=2D); output layer fused
# ([h|r] @ [wc;wr] -> one MXU call, lane-dense 128-wide store); decode is a
# single add + select using precomputed per-lane scale/shift/mask vectors.
# ----------------------------------------------------------------------------
def _layernorm(x, gamma, beta, eps=1e-5):
    mu = jnp.mean(x, axis=-1, keepdims=True)
    var = jnp.mean((x - mu) ** 2, axis=-1, keepdims=True)
    return (x - mu) * lax.rsqrt(var + eps) * gamma + beta


def _inverse_sigmoid(x, eps=1e-5):
    x = jnp.clip(x, 0.0, 1.0)
    x1 = jnp.maximum(x, eps)
    x2 = jnp.maximum(1.0 - x, eps)
    return jnp.log(x1 / x2)


def _head_kernel(hs_ref, ref_ref, wf1_ref, w2_ref, r2_ref, wo_ref, vec_ref, out_ref):
    x = hs_ref[0]                          # (tm, D), activation/compute dtype
    d = x.shape[-1]
    cdt = x.dtype

    # Packed vectors: biases / LN affine / output bias / decode lane constants.
    bf1 = vec_ref[0:1, :]                          # (1, 2D)
    g1, be1 = vec_ref[1:2, :d], vec_ref[1:2, d:]
    b2, g2 = vec_ref[2:3, :d], vec_ref[2:3, d:]
    be2, rb2 = vec_ref[3:4, :d], vec_ref[3:4, d:]
    bo = vec_ref[4:5, :_OUT_LANES]
    scale = vec_ref[5:6, :_OUT_LANES]
    shift = vec_ref[6:7, :_OUT_LANES]
    sig = vec_ref[7:8, :_OUT_LANES] != 0.0         # (1, 128) bool

    # ---- layer 1, fused cls+reg: one MXU call with N = 2D (D % 128 == 0) ----
    h01 = jnp.dot(x, wf1_ref[...], preferred_element_type=jnp.float32) + bf1
    hc = jnp.maximum(_layernorm(h01[:, :d], g1, be1), 0.0)
    hr = jnp.maximum(h01[:, d:], 0.0)

    # ---- layer 2 (different activations per branch; cannot fuse) ----
    h = jnp.dot(hc.astype(cdt), w2_ref[...], preferred_element_type=jnp.float32) + b2
    h = jnp.maximum(_layernorm(h, g2, be2), 0.0)
    r = jnp.maximum(
        jnp.dot(hr.astype(cdt), r2_ref[...], preferred_element_type=jnp.float32) + rb2,
        0.0)

    # ---- output layer: [h | r] @ [wc ; wr] -> one MXU call, lane-dense tile ----
    hr2 = jnp.concatenate([h.astype(cdt), r.astype(cdt)], axis=-1)   # (tm, 2D), aligned
    out = jnp.dot(hr2, wo_ref[...], preferred_element_type=jnp.float32) + bo  # (tm,128)

    # ---- box decode: refs were inverse-sigmoid'd & lane-placed by the wrapper ----
    t = out + ref_ref[0].astype(jnp.float32)
    decoded = jnp.where(sig, jax.nn.sigmoid(t) * scale + shift, t)
    out_ref[0] = decoded.astype(out_ref.dtype)


_WEIGHT_ORDER = ('wf1', 'w2', 'r2', 'wo', 'vec')


def detection_head(hs_flat, refs_flat, fused, num_cls, code_size, *, tm=None):
    """hs_flat: (L, M, D); refs_flat: (L, M, 3) -> (cls (L,M,C), coord (L,M,code))."""
    L, M, D = hs_flat.shape
    assert D % 128 == 0, "embed_dims must be a multiple of the 128-lane width"
    assert num_cls + code_size <= _OUT_LANES
    cdt = jnp.dtype(fused['wf1'].dtype)
    hs_flat = hs_flat.astype(cdt)   # in production the transformer already emits bf16

    # Token tiling: as big as padding allows (amortizes per-grid-step overhead,
    # keeps the MXU M dimension full); multiple of 8; capped at 1024 (~1.5 MiB
    # of VMEM per step even at D=256 bf16, fine on all generations incl. v7x).
    if tm is None:
        tm = min(_round_up(M, 8), 1024)
    tm = max(8, _round_up(tm, 8))
    m_pad = _round_up(M, tm)
    m_tiles = m_pad // tm           # NOTE: on v7x, L * m_tiles >= 2 uses both cores

    if m_pad != M:
        hs_p = jnp.zeros((L, m_pad, D), cdt).at[:, :M, :].set(hs_flat)
    else:
        hs_p = hs_flat

    # inverse_sigmoid is precomputed here (tiny one-time XLA op) and placed into
    # the exact lanes it is added to, so the kernel decode is a plain add+select.
    ris = _inverse_sigmoid(refs_flat.astype(jnp.float32))
    refs_p = jnp.zeros((L, m_pad, _OUT_LANES), jnp.float32)
    refs_p = refs_p.at[:, :M, num_cls + 0].set(ris[..., 0])
    refs_p = refs_p.at[:, :M, num_cls + 1].set(ris[..., 1])
    refs_p = refs_p.at[:, :M, num_cls + 4].set(ris[..., 2])
    # Only 3 of 128 lanes are live: on the bf16 path store refs at bf16 to halve
    # this stream's HBM traffic (v5e/v6e are near the memory roofline here).
    refs_p = refs_p.astype(cdt if cdt.itemsize < 4 else jnp.float32)

    weights = [fused[k] for k in _WEIGHT_ORDER]

    out = pl.pallas_call(
        _head_kernel,
        grid=(L, m_tiles),
        in_specs=([pl.BlockSpec((1, tm, D), lambda l, m: (l, m, 0)),
                   pl.BlockSpec((1, tm, _OUT_LANES), lambda l, m: (l, m, 0))]
                  + [pl.BlockSpec(w.shape, lambda l, m: (0, 0)) for w in weights]),
        out_specs=pl.BlockSpec((1, tm, _OUT_LANES), lambda l, m: (l, m, 0)),
        # Output stays f32 regardless of the activation dtype so decoded box
        # coordinates (range ~±51 m) keep full precision.
        out_shape=jax.ShapeDtypeStruct((L, m_pad, _OUT_LANES), jnp.float32),
        compiler_params=pltpu.CompilerParams(
            dimension_semantics=("parallel", "parallel")),
    )(hs_p, refs_p, *weights)

    cls = out[:, :M, :num_cls]
    coord = out[:, :M, num_cls:num_cls + code_size]
    return cls, coord


# ----------------------------------------------------------------------------
# The head module (parameter setup + glue in plain JAX)
# ----------------------------------------------------------------------------
class BEVFormerHeadGroupDETR:
    def __init__(self, key, *, group_detr, num_query, bev_h, bev_w, embed_dims,
                 num_feats, pc_range, cls_out_channels=10, code_size=10,
                 num_decoder_layers=3, token_tile=None, compute_dtype=jnp.float32):
        self.group_detr = group_detr
        self.num_query = group_detr * num_query            # GroupDETR: scale queries
        self.bev_h, self.bev_w = bev_h, bev_w
        self.embed_dims = embed_dims
        self.pc_range = pc_range
        self.code_size = code_size
        self.cls_out_channels = cls_out_channels
        self.num_decoder_layers = num_decoder_layers
        self.token_tile = token_tile
        self.compute_dtype = jnp.dtype(compute_dtype)
        self.code_weights = jnp.asarray(
            [1.0, 1.0, 1.0, 1.0, 1.0, 1.0, 1.0, 1.0, 0.2, 0.2], jnp.float32)

        ks = jax.random.split(key, 16)
        D, C = embed_dims, cls_out_channels
        n = lambda k, s, sc=0.05: (sc * jax.random.normal(k, s)).astype(jnp.float32)

        # Embedding tables.
        self.bev_embedding = n(ks[0], (bev_h * bev_w, D))
        self.query_embedding = n(ks[1], (self.num_query, 2 * D))
        # Positional-encoding tables stored pre-transposed (feature-major) so the
        # kernel emits NCHW directly (equivalent to nn.Embedding weights (h, F).T).
        self.row_embed_t = n(ks[2], (num_feats, bev_h))
        self.col_embed_t = n(ks[3], (num_feats, bev_w))

        # Shared (with_box_refine=False) cls / reg branch weights in logical
        # (in, out) layout — kept for the pure-JAX reference / exact PyTorch match.
        self.params = dict(
            w1=n(ks[4], (D, D)), b1=n(ks[5], (1, D)),
            g1=jnp.ones((1, D), jnp.float32), be1=jnp.zeros((1, D), jnp.float32),
            w2=n(ks[6], (D, D)), b2=n(ks[7], (1, D)),
            g2=jnp.ones((1, D), jnp.float32), be2=jnp.zeros((1, D), jnp.float32),
            wc=n(ks[8], (D, C)), bc=n(ks[9], (1, C)),
            r1=n(ks[10], (D, D)), rb1=n(ks[11], (1, D)),
            r2=n(ks[12], (D, D)), rb2=n(ks[13], (1, D)),
            rr=n(ks[14], (D, code_size)), rbr=n(ks[15], (1, code_size)),
        )
        # Fused / packed weights built (and cast to the compute dtype) ONCE here,
        # not per forward call.
        self.fused = self._build_fused(self.params, self.compute_dtype)

    def _build_fused(self, p, compute_dtype):
        """Fuse shared-input / shared-output layers and pack all small vectors."""
        D, C, S = self.embed_dims, self.cls_out_channels, self.code_size
        pc = [float(v) for v in self.pc_range]
        cdt = jnp.dtype(compute_dtype)

        # Output layer: cls / reg weights stacked along K and lane-padded to 128.
        wo = jnp.zeros((2 * D, _OUT_LANES), jnp.float32)
        wo = wo.at[:D, :C].set(p['wc']).at[D:, C:C + S].set(p['rr'])
        bo = (jnp.zeros((_OUT_LANES,), jnp.float32)
              .at[:C].set(p['bc'][0]).at[C:C + S].set(p['rbr'][0]))

        # Precomputed decode lane constants (replace iota + nested wheres).
        scale = np.ones(_OUT_LANES, np.float32)
        shift = np.zeros(_OUT_LANES, np.float32)
        sigm = np.zeros(_OUT_LANES, np.float32)
        for lane, lo, hi in ((C, pc[0], pc[3]), (C + 1, pc[1], pc[4]),
                             (C + 4, pc[2], pc[5])):
            scale[lane], shift[lane], sigm[lane] = hi - lo, lo, 1.0

        # All (1,D)/(1,128) vectors packed into a single (8, 2D) f32 input.
        vec = jnp.zeros((8, 2 * D), jnp.float32)
        vec = vec.at[0, :].set(jnp.concatenate([p['b1'][0], p['rb1'][0]]))
        vec = vec.at[1, :D].set(p['g1'][0]).at[1, D:].set(p['be1'][0])
        vec = vec.at[2, :D].set(p['b2'][0]).at[2, D:].set(p['g2'][0])
        vec = vec.at[3, :D].set(p['be2'][0]).at[3, D:].set(p['rb2'][0])
        vec = vec.at[4, :_OUT_LANES].set(bo)
        vec = vec.at[5, :_OUT_LANES].set(jnp.asarray(scale))
        vec = vec.at[6, :_OUT_LANES].set(jnp.asarray(shift))
        vec = vec.at[7, :_OUT_LANES].set(jnp.asarray(sigm))

        return dict(
            wf1=jnp.concatenate([p['w1'], p['r1']], axis=1).astype(cdt),  # (D, 2D)
            w2=p['w2'].astype(cdt), r2=p['r2'].astype(cdt),
            wo=wo.astype(cdt),                                            # (2D, 128)
            vec=vec)                                                      # (8, 2D) f32

    def forward(self, mlvl_feats, hs, init_reference, inter_references,
                bev_embed, training=False):
        bs = mlvl_feats[0].shape[0]
        dtype = mlvl_feats[0].dtype

        object_query_embeds = self.query_embedding.astype(dtype)
        if not training:
            object_query_embeds = object_query_embeds[: self.num_query // self.group_detr]
        bev_queries = self.bev_embedding.astype(dtype)
        bev_mask = jnp.zeros((bs, self.bev_h, self.bev_w), dtype)           # noqa: F841
        bev_pos = learned_positional_encoding(
            self.col_embed_t, self.row_embed_t, bs).astype(dtype)

        # TODO(synk): self.transformer(...) would consume mlvl_feats, bev_queries,
        # object_query_embeds, bev_pos here; its outputs are supplied as inputs.
        del bev_queries, object_query_embeds, bev_pos, bev_mask

        hs = jnp.transpose(hs, (0, 2, 1, 3))                 # (L, bs, nq, D)
        L, bs_, nq, D = hs.shape
        refs = jnp.concatenate([init_reference[None], inter_references[:L - 1]], axis=0)

        hs_flat = hs.reshape(L, bs_ * nq, D)
        refs_flat = refs.reshape(L, bs_ * nq, 3)
        cls_flat, coord_flat = detection_head(
            hs_flat, refs_flat, self.fused, self.cls_out_channels,
            self.code_size, tm=self.token_tile)

        outputs_classes = cls_flat.reshape(L, bs_, nq, self.cls_out_channels)
        outputs_coords = coord_flat.reshape(L, bs_, nq, self.code_size)
        return {'bev_embed': bev_embed,
                'all_cls_scores': outputs_classes,
                'all_bbox_preds': outputs_coords,
                'enc_cls_scores': None,
                'enc_bbox_preds': None}


# ----------------------------------------------------------------------------
# Pure-JAX references (for correctness spot-checks)
# ----------------------------------------------------------------------------
def _head_reference(hs_flat, refs_flat, p, pc):
    def ln(x, g, b):
        mu = x.mean(-1, keepdims=True)
        var = ((x - mu) ** 2).mean(-1, keepdims=True)
        return (x - mu) / jnp.sqrt(var + 1e-5) * g + b
    h = jnp.maximum(ln(hs_flat @ p['w1'] + p['b1'], p['g1'], p['be1']), 0.0)
    h = jnp.maximum(ln(h @ p['w2'] + p['b2'], p['g2'], p['be2']), 0.0)
    cls = h @ p['wc'] + p['bc']
    r = jnp.maximum(hs_flat @ p['r1'] + p['rb1'], 0.0)
    r = jnp.maximum(r @ p['r2'] + p['rb2'], 0.0)
    tmp = r @ p['rr'] + p['rbr']
    ris = _inverse_sigmoid(refs_flat)
    xy = jax.nn.sigmoid(tmp[..., 0:2] + ris[..., 0:2])
    cx = xy[..., 0:1] * (pc[3] - pc[0]) + pc[0]
    cy = xy[..., 1:2] * (pc[4] - pc[1]) + pc[1]
    cz = jax.nn.sigmoid(tmp[..., 4:5] + ris[..., 2:3]) * (pc[5] - pc[2]) + pc[2]
    coord = jnp.concatenate([cx, cy, tmp[..., 2:4], cz, tmp[..., 5:]], axis=-1)
    return cls, coord


def _pos_reference(col_t, row_t, bs):
    f, w = col_t.shape
    h = row_t.shape[1]
    x_emb = jnp.broadcast_to(col_t[:, None, :], (f, h, w))
    y_emb = jnp.broadcast_to(row_t[:, :, None], (f, h, w))
    pos = jnp.concatenate([x_emb, y_emb], axis=0)
    return jnp.broadcast_to(pos[None], (bs, 2 * f, h, w))


if __name__ == "__main__":
    key = jax.random.PRNGKey(0)
    k_feat, k_hs, k_init, k_inter, k_bev, k_par = jax.random.split(key, 6)

    # Small synthetic config. embed_dims = 128 so the lane-aligned fused paths
    # (matching production embed_dims = 256) are exercised; M = bs*nq is not a
    # multiple of 8 so padding is exercised too.
    bs, num_cam, C_img, H_img, W_img = 2, 2, 4, 16, 16
    embed_dims, num_feats = 128, 16
    bev_h = bev_w = 16
    group_detr, num_query_per_group = 2, 9
    num_levels = 3
    pc_range = [-51.2, -51.2, -5.0, 51.2, 51.2, 3.0]

    head = BEVFormerHeadGroupDETR(
        k_par, group_detr=group_detr, num_query=num_query_per_group,
        bev_h=bev_h, bev_w=bev_w, embed_dims=embed_dims, num_feats=num_feats,
        pc_range=pc_range, cls_out_channels=10, code_size=10,
        num_decoder_layers=num_levels, compute_dtype=jnp.float32)

    nq_eval = head.num_query // group_detr          # eval-mode query count
    mlvl_feats = [jax.random.normal(k_feat, (bs, num_cam, C_img, H_img, W_img), jnp.float32)]
    # Synthetic transformer outputs (hs comes out as (L, num_query, bs, D), like PyTorch).
    hs = jax.random.normal(k_hs, (num_levels, nq_eval, bs, embed_dims), jnp.float32)
    init_reference = jax.random.uniform(k_init, (bs, nq_eval, 3), jnp.float32, 0.05, 0.95)
    inter_references = jax.random.uniform(k_inter, (num_levels, bs, nq_eval, 3),
                                          jnp.float32, 0.05, 0.95)
    bev_embed = jax.random.normal(k_bev, (bev_h * bev_w, bs, embed_dims), jnp.float32)

    outs = head.forward(mlvl_feats, hs, init_reference, inter_references,
                        bev_embed, training=False)
    jax.block_until_ready(outs['all_cls_scores'])
    jax.block_until_ready(outs['all_bbox_preds'])

    # Correctness spot-check of the head kernel (f32 path) vs plain-JAX reference.
    hs_perm = jnp.transpose(hs, (0, 2, 1, 3)).reshape(num_levels, bs * nq_eval, embed_dims)
    refs = jnp.concatenate([init_reference[None], inter_references[:num_levels - 1]], 0)
    refs = refs.reshape(num_levels, bs * nq_eval, 3)
    ref_cls, ref_coord = _head_reference(hs_perm, refs, head.params, pc_range)
    ref_cls = ref_cls.reshape(num_levels, bs, nq_eval, -1)
    ref_coord = ref_coord.reshape(num_levels, bs, nq_eval, -1)
    assert jnp.allclose(outs['all_cls_scores'], ref_cls, atol=1e-3, rtol=1e-3)
    assert jnp.allclose(outs['all_bbox_preds'], ref_coord, atol=1e-3, rtol=1e-3)
    assert outs['bev_embed'].shape == (bev_h * bev_w, bs, embed_dims)

    # Correctness spot-check of the gridded positional-encoding kernel.
    pos = learned_positional_encoding(head.col_embed_t, head.row_embed_t, bs)
    pos_ref = _pos_reference(head.col_embed_t, head.row_embed_t, bs)
    jax.block_until_ready(pos)
    assert pos.shape == (bs, 2 * num_feats, bev_h, bev_w)
    assert jnp.allclose(pos, pos_ref, atol=1e-6, rtol=1e-6)

    # bf16 MXU path (the production configuration): weights cast once at build,
    # hs fed in bf16, decode + output stay f32. Loose numerical check only.
    head_bf16 = BEVFormerHeadGroupDETR(
        k_par, group_detr=group_detr, num_query=num_query_per_group,
        bev_h=bev_h, bev_w=bev_w, embed_dims=embed_dims, num_feats=num_feats,
        pc_range=pc_range, cls_out_channels=10, code_size=10,
        num_decoder_layers=num_levels, compute_dtype=jnp.bfloat16)
    outs16 = head_bf16.forward(mlvl_feats, hs, init_reference, inter_references,
                               bev_embed, training=False)
    jax.block_until_ready(outs16['all_bbox_preds'])
    assert outs16['all_cls_scores'].dtype == jnp.float32      # output stays f32
    assert bool(jnp.all(jnp.isfinite(outs16['all_bbox_preds'])))
    assert jnp.allclose(outs16['all_cls_scores'], ref_cls, atol=0.2, rtol=0.05)
    assert jnp.allclose(outs16['all_bbox_preds'], ref_coord, atol=2.0, rtol=0.1)

    print("KERNEL_OK")
</pallas_src>

<mosaic_0001>
module attributes {stable_mosaic.version = 11 : i64} {
  func.func @_pos_encoding_kernel(%arg0: i32, %arg1: memref<8x16xf32, #tpu.memory_space<vmem>>, %arg2: memref<8x16xf32, #tpu.memory_space<vmem>>, %arg3: memref<8x16x16xf32, #tpu.memory_space<vmem>>) attributes {dimension_semantics = [#tpu.dimension_semantics<arbitrary>], iteration_bounds = array<i64: 4>, scalar_prefetch = 0 : i64, scratch_operands = 0 : i64, tpu.core_type = #tpu.core_type<tc>, window_params = [{transform_indices = @transform_0, window_bounds = array<i64: 8, 16>}, {transform_indices = @transform_1, window_bounds = array<i64: 8, 16>}, {transform_indices = @transform_2, window_bounds = array<i64: 8, 16, 16>}]} {
    %c2_i32 = arith.constant 2 : i32
    %0 = arith.cmpi slt, %arg0, %c2_i32 : i32
    %1 = arith.extui %0 : i1 to i32
    %c0_i32 = arith.constant 0 : i32
    %2 = arith.cmpi ne, %1, %c0_i32 : i32
    scf.if %2 {
      %c0 = arith.constant 0 : index
      %c0_2 = arith.constant 0 : index
      %6 = vector.load %arg1[%c0, %c0_2] : memref<8x16xf32, #tpu.memory_space<vmem>>, vector<8x16xf32>
      %7 = vector.shape_cast %6 : vector<8x16xf32> to vector<8x1x16xf32>
      %8 = vector.shape_cast %7 : vector<8x1x16xf32> to vector<8x1x16xf32>
      %9 = vector.broadcast %8 : vector<8x1x16xf32> to vector<8x16x16xf32>
      %c0_3 = arith.constant 0 : index
      %c0_4 = arith.constant 0 : index
      %c0_5 = arith.constant 0 : index
      %10 = vector.load %arg3[%c0_3, %c0_4, %c0_5] : memref<8x16x16xf32, #tpu.memory_space<vmem>>, vector<8x16x16xf32>
      tpu.vector_store %arg3[%c0_3, %c0_4, %c0_5], %9 {strides = array<i32>} : memref<8x16x16xf32, #tpu.memory_space<vmem>>, vector<8x16x16xf32>,
    } else {
    }
    %c2_i32_0 = arith.constant 2 : i32
    %3 = arith.cmpi sge, %arg0, %c2_i32_0 : i32
    %4 = arith.extui %3 : i1 to i32
    %c0_i32_1 = arith.constant 0 : i32
    %5 = arith.cmpi ne, %4, %c0_i32_1 : i32
    scf.if %5 {
      %c0 = arith.constant 0 : index
      %c0_2 = arith.constant 0 : index
      %6 = vector.load %arg2[%c0, %c0_2] : memref<8x16xf32, #tpu.memory_space<vmem>>, vector<8x16xf32>
      %7 = vector.shape_cast %6 : vector<8x16xf32> to vector<8x16x1xf32>
      %8 = vector.shape_cast %7 : vector<8x16x1xf32> to vector<8x16x1xf32>
      %9 = vector.broadcast %8 : vector<8x16x1xf32> to vector<8x16x16xf32>
      %c0_3 = arith.constant 0 : index
      %c0_4 = arith.constant 0 : index
      %c0_5 = arith.constant 0 : index
      %10 = vector.load %arg3[%c0_3, %c0_4, %c0_5] : memref<8x16x16xf32, #tpu.memory_space<vmem>>, vector<8x16x16xf32>
      tpu.vector_store %arg3[%c0_3, %c0_4, %c0_5], %9 {strides = array<i32>} : memref<8x16x16xf32, #tpu.memory_space<vmem>>, vector<8x16x16xf32>,
    } else {
    }
    return
  }
  func.func @transform_0(%arg0: i32) -> (i32, i32) {
    %c1_i32 = arith.constant 1 : i32
    %0 = arith.minsi %arg0, %c1_i32 : i32
    %c0_i32 = arith.constant 0 : i32
    %c0_i32_0 = arith.constant 0 : i32
    return %0, %c0_i32 : i32, i32
  }
  func.func @transform_1(%arg0: i32) -> (i32, i32) {
    %c2_i32 = arith.constant 2 : i32
    %0 = arith.subi %arg0, %c2_i32 : i32
    %c0_i32 = arith.constant 0 : i32
    %1 = arith.maxsi %0, %c0_i32 : i32
    %c0_i32_0 = arith.constant 0 : i32
    %c0_i32_1 = arith.constant 0 : i32
    return %1, %c0_i32_0 : i32, i32
  }
  func.func @transform_2(%arg0: i32) -> (i32, i32, i32) {
    %c0_i32 = arith.constant 0 : i32
    %c0_i32_0 = arith.constant 0 : i32
    %c0_i32_1 = arith.constant 0 : i32
    return %arg0, %c0_i32, %c0_i32_0 : i32, i32, i32
  }
}

</mosaic_0001>

<bundles_post_ra>
// kernel: tpu_custom_call.1
= control target key start
LH: loop header
LB: loop body
LE: loop exit
PB: predicated region body
PF: predicated region fallthrough
CT: control target
= control target key end

     0   :  { %7 = vsyncpa [#allocation3], 0  ;;  %s1052_s0 = inlined_call_operand.hbm [shape: f32[16,16], index: 0, kind: input, shape index: {}]   ;;  %s1053_s1 = inlined_call_operand.hbm [shape: f32[16,16], index: 1, kind: input, shape index: {}]   ;;  %s1054_s2 = inlined_call_operand.vmem [shape: f32[32,16,16], index: 2, kind: output, shape index: {}]  }
   0x1   :  { %9 = vsyncpa [#allocation3 + $0x1], 0 }
   0x2   :  { %10 = vsyncpa [#allocation5], 0 }
   0x3   :  { %12 = vsyncpa [#allocation5 + $0x1], 0  ;;  %s768_s9 = smov 0   ;;  %s770_s10 = smov 0  }
   0x4   :  { %s772_s11 = smov 0   ;;  %s774_s12 = smov 0  }
   0x5   :  { %s776_s13 = smov 0   ;;  %s778_s14 = smov 0  }
   0x6   :  { %s780_s15 = smov 0  }
   0x7 LB: > { %s802_s16 = sadd.s32 4294967295, %s748_s15   ;;  %s805_s17 = sadd.s32 1, %s748_s15   ;;  %s748_s15 = sphi %s780_s15, %s1079_s15   ;;  %s744_s14 = sphi %s778_s14, %s1078_s14   ;;  %s740_s13 = sphi %s776_s13, %s1077_s13   ;;  %s736_s12 = sphi %s774_s12, %s1076_s12   ;;  %s732_s11 = sphi %s772_s11, %s1075_s11   ;;  %s728_s10 = sphi %s770_s10, %s1074_s10   ;;  %s724_s9 = sphi %s768_s9, %s1073_s9  }
   0x8   : > { %p22_p0 = scmp.lt.s32.totalorder %s748_s15, 1  ;;  %p24_p1 = scmp.lt.s32.totalorder %s805_s17, 1 }
   0x9   : > { %s29_s18 = sadd.s32 1, %s744_s14  ;;  %p36_p2 = scmp.ne.s32.totalorder %s744_s14, %s740_s13 }
   0xa   : > { %s23_s19 = scalar_select %p22_p0, %s748_s15, 1 }
   0xb   : > { %s25_s20 = scalar_select %p24_p1, %s805_s17, 1 }
   0xc   : > { %p1057_p3 = scmp.eq.s32.totalorder %s748_s15, 0  ;;  %p42_p4 = scmp.ne.s32.totalorder %s740_s13, %s736_s12 }
   0xd   : > { %s26_s21 = ssub.s32 %s23_s19, %s25_s20  ;;  %p1056_p5 = scmp.eq.s32.totalorder %s802_s16, 0 }
   0xe   : > { %p27_p6 = scmp.eq.s32.totalorder %s26_s21, 0  ;;  %p38_p7 = por %p1057_p3, %p36_p2 }
   0xf   : > { %p821_p8 = por %p1056_p5, %p42_p4  ;;  %p1055_p9 = scmp.lt.s32.totalorder %s748_s15, 4 }
  0x10   : > { %s826_s23 = scalar_select %p27_p6, %s744_s14, %s29_s18  }
  0x11   : > { %s1060_s22 = scalar_select %p821_p8, 1, 0 }
  0x12   : > { %s124_s24 = sand.u32 1, %s744_s14   ;;  %s542_s26 = sshll.u32 %s23_s19, 7 }
  0x13   : > { %s541_s25 = sshll.u32 %s124_s24, 3  ;;  %s833_s29 = scalar_lea.hbm %s1052_s0, %s542_s26 }
  0x14   : > { %s128_s30 = scalar_lea.vmem [#allocation2], %s541_s25  ;;  %p839_p10 = pnand %p1055_p9, %p38_p7 }
  0x15   : > { %s137_s3 = sshll.u32 %s128_s30, 4  ;;  %s125_s5 = scalar_lea.sflag [#allocation3], %s124_s24  ;;  %s835_s3 = int_to_ptr.vmem [resolvable:$true] %s137_s3 }
  0x16   : > { %s626_s6 = scalar_lea.hbm %s833_s29, 128  ;;  %p628_p0 = pneg %p839_p10 }
  0x17   : > { %p627_p13 = scmp.ne.s32.totalorder %s833_s29, %s626_s6  ;;  %s631_s12 = scalar_lea.hbm %s1052_s0, 256 }
  0x18   : > { %p632_p4 = scmp.lt.u32.totalorder %s833_s29, %s1052_s0  ;;  %p633_p6 = scmp.lt.u32.totalorder %s631_s12, %s626_s6 }
  0x19   : > { %p629_p1 = pnand %p628_p0, %p627_p13  ;;  %p635_p9 = scmp.lt.u32.totalorder %s626_s6, %s833_s29 }
  0x1a   : > { %p634_p7 = por %p633_p6, %p632_p4 }
  0x1b   : > { %p630_p2 = pneg %p629_p1 }
  0x1c   : > { %p636_p5 = por %p635_p9, %p634_p7 }
  0x1e   : > { %p637_p3 = pnand %p636_p5, %p630_p2 }
  0x20   : > { %640 = shalt.err (!%p637_p3)
}
  0x21   : > { %s641_s20 = scalar_lea.vmem %s835_s3, 128  ;;  %s750_s21 = smov [#allocation2]  }
  0x22   : > { %p642_p13 = scmp.ne.s32.totalorder %s835_s3, %s641_s20  ;;  %s646_s24 = sshll.u32 %s750_s21, 4  ;;  %s647_s24 = int_to_ptr.vmem [resolvable:$false] %s646_s24 }
  0x23   : > { %s648_s25 = scalar_lea.vmem %s647_s24, 256  ;;  %p649_p12 = scmp.lt.s32.totalorder %s835_s3, %s647_s24 }
  0x24   : > { %p644_p1 = pnand %p642_p13, %p628_p0  ;;  %p650_p4 = scmp.lt.s32.totalorder %s648_s25, %s641_s20 }
  0x26   : > { %p645_p11 = pneg %p644_p1  ;;  %p651_p6 = por %p650_p4, %p649_p12 }
  0x28   : > { %p652_p9 = pnand %p651_p6, %p645_p11 }
  0x2a   : > { %655 = shalt.err (!%p652_p9)
}
  0x2b   : > { %564 = dma.hbm_to_vmem [thread:$0]  (!%p839_p10), %s833_s29, 128, %s835_s3, %s125_s5  }
  0x2c   : > { %p1062_p3 = scmp.lt.s32.totalorder %s748_s15, 5  ;;  %p1063_p5 = scmp.ge.s32.totalorder %s748_s15, 1 }
  0x2d   : > { %s537_s27 = sadd.s32 4294967294, %s748_s15  ;;  %s538_s28 = sadd.s32 4294967294, %s805_s17 }
  0x2e   : > { %p874_p11 = pnand %p1063_p5, %p1062_p3  ;;  %p53_p12 = scmp.gt.s32.totalorder %s537_s27, 0 }
  0x2f   : > { %p56_p0 = scmp.gt.s32.totalorder %s538_s28, 0  ;;  %s61_s30 = sadd.s32 1, %s732_s11 }
  0x30   : > { %p68_p2 = scmp.ne.s32.totalorder %s732_s11, %s728_s10  ;;  %s1081_s27 = smov (!%p53_p12, %s537_s27), 0 }
  0x31   : > { %s1083_s28 = smov (!%p56_p0, %s538_s28), 0  ;;  %p1065_p7 = scmp.eq.s32.totalorder %s748_s15, 0 }
  0x32   : > { %p74_p10 = scmp.ne.s32.totalorder %s728_s10, %s724_s9  ;;  %s58_s29 = ssub.s32 %s1081_s27, %s1083_s28 }
  0x33   : > { %p885_p13 = por %p68_p2, %p1065_p7  ;;  %s144_s3 = sand.u32 1, %s732_s11  }
  0x34   : > { %p59_p1 = scmp.eq.s32.totalorder %s58_s29, 0  ;;  %p1067_p4 = scmp.eq.s32.totalorder %s802_s16, 0 }
  0x35   : > { %s543_s6 = sshll.u32 %s144_s3, 3  ;;  %s545_s8 = sshll.u32 %s1081_s27, 7 }
  0x36   : > { %p894_p6 = por %p74_p10, %p1067_p4  ;;  %s904_s19 = scalar_lea.hbm %s1053_s1, %s545_s8 }
  0x37   : > { %s899_s7 = scalar_select %p59_p1, %s732_s11, %s61_s30  }
  0x38   : > { %s1068_s5 = scalar_select %p894_p6, 1, 0 }
  0x39   : > { %s148_s9 = scalar_lea.vmem [#allocation4], %s543_s6  ;;  %p1069_p9 = scmp.lt.s32.totalorder %s748_s15, 4 }
  0x3a   : > { %s158_s20 = sshll.u32 %s148_s9, 4  ;;  %s145_s24 = scalar_lea.sflag [#allocation5], %s144_s3  ;;  %s906_s20 = int_to_ptr.vmem [resolvable:$true] %s158_s20 }
  0x3b   : > { %p912_p3 = pnand %p1069_p9, %p885_p13  ;;  %s656_s25 = scalar_lea.hbm %s904_s19, 128 }
  0x3c   : > { %p657_p5 = scmp.ne.s32.totalorder %s904_s19, %s656_s25  ;;  %s661_s30 = scalar_lea.hbm %s1053_s1, 256 }
  0x3d   : > { %p658_p12 = pneg %p912_p3  ;;  %p662_p7 = scmp.lt.u32.totalorder %s904_s19, %s1053_s1 }
  0x3e   : > { %p663_p13 = scmp.lt.u32.totalorder %s661_s30, %s656_s25  ;;  %p665_p1 = scmp.lt.u32.totalorder %s656_s25, %s904_s19 }
  0x3f   : > { %p659_p0 = pnand %p658_p12, %p657_p5 }
  0x40   : > { %p664_p10 = por %p663_p13, %p662_p7 }
  0x41   : > { %p660_p2 = pneg %p659_p0 }
  0x42   : > { %p666_p4 = por %p665_p1, %p664_p10 }
  0x44   : > { %p667_p9 = pnand %p666_p4, %p660_p2 }
  0x46   : > { %670 = shalt.err (!%p667_p9)
}
  0x47   : > { %s671_s29 = scalar_lea.vmem %s906_s20, 128  ;;  %s751_s3 = smov [#allocation4]  }
  0x48   : > { %p672_p5 = scmp.ne.s32.totalorder %s906_s20, %s671_s29  ;;  %s676_s6 = sshll.u32 %s751_s3, 4  ;;  %s677_s6 = int_to_ptr.vmem [resolvable:$false] %s676_s6 }
  0x49   : > { %s678_s8 = scalar_lea.vmem %s677_s6, 256  ;;  %p679_p8 = scmp.lt.s32.totalorder %s906_s20, %s677_s6 }
  0x4a   : > { %p674_p0 = pnand %p672_p5, %p658_p12  ;;  %p680_p7 = scmp.lt.s32.totalorder %s678_s8, %s671_s29 }
  0x4c   : > { %p675_p6 = pneg %p674_p0  ;;  %p681_p13 = por %p680_p7, %p679_p8 }
  0x4e   : > { %p682_p10 = pnand %p681_p13, %p675_p6 }
  0x50   : > { %685 = shalt.err (!%p682_p10)
}
  0x51   : > { %567 = dma.hbm_to_vmem [thread:$0]  (!%p912_p3), %s904_s19, 128, %s906_s20, %s145_s24  }
  0x52   : > { %167 = sbr.rel (%p874_p11) target bundleno = 269 (0x10d), region = 28  ;;  %s169_s12 = sand.u32 (!%p874_p11), 1, %s740_s13  }
  0x53   : > { %s547_s18 = sshll.u32 (!%p874_p11), %s169_s12, 3  ;;  %s170_s9 = scalar_lea.sflag (!%p874_p11), [#allocation3], %s169_s12 }
  0x54   : > { %s173_s25 = scalar_lea.vmem (!%p874_p11), [#allocation2], %s547_s18  ;;  %p1071_p12 = scmp.ne.s32.totalorder (!%p874_p11), %s1060_s22, 0 }
  0x59   : > { %715 = dma.done.wait (%p1071_p12), %s170_s9, 128  }
  0x5a   : > { %717 = vsyncadd (%p1071_p12), %s170_s9, 4294967168  ;;  %s178_s21 = sand.u32 1, %s728_s10   ;;  %p1072_p8 = scmp.ne.s32.totalorder %s1068_s5, 0 }
  0x5b   : > { %s949_s27 = sshll.u32 %s178_s21, 3  ;;  %s179_s19 = scalar_lea.sflag [#allocation5], %s178_s21 }
  0x5c   : > { %s182_s26 = scalar_lea.vmem [#allocation4], %s949_s27 }
  0x5d   : > { %719 = dma.done.wait (%p1072_p8), %s179_s19, 128  }
  0x5e   : > { %721 = vsyncadd (%p1072_p8), %s179_s19, 4294967168  ;;  %s549_s20 = sshll.u32 %s802_s16, 3  ;;  %p552_p6 = scmp.ge.s32.totalorder %s802_s16, 2 }
  0x5f   : > { %p215_p11 = scmp.lt.s32.totalorder %s549_s20, 31  ;;  %v225_v0 = vld [vmem:[%s173_s25] sm:$0xff] (!%p552_p6)  ;;  %v231_v1 = vlaneseq (!%p552_p6)  ;;  %v752_v2 = vmov (!%p552_p6), 1966171168   ;;  %vm316_vm0 = vcmask (!%p552_p6), 130048  }
  0x60   : > { %224 = sbr.rel (%p552_p6) target bundleno = 116 (0x74), region = 40  ;;  %v229_v3 = vunpack.c.l.s4 (!%p552_p6), %v752_v2  ;;  %v227_v6 = vcombine.high (!%p552_p6), %v225_v0, %v225_v0 }
  0x61   : > { %s1085_s20 = smov (!%p215_p11, %s549_s20), 31  ;;  %v232_v4 = vshrl.u32 (!%p552_p6), %v231_v1, 7 }
  0x62   : > { %s556_s24 = sshll.u32 %s1085_s20, 4  ;;  %v230_v5 = vunpack.c.0.s8 (!%p552_p6), %v229_v3 }
  0x63   : > { %s960_s30 = scalar_lea.vmem %s1054_s2, %s556_s24  ;;  %v278_v9 = vsub.s32 (!%p552_p6), 0, %v232_v4 }
  0x64   : > { %v233_v7 = vsub.s32 (!%p552_p6), %v230_v5, %v232_v4 }
  0x66   : > { %v234_v8 = vrot.slane (!%p552_p6), %v225_v0, %v233_v7  ;;  %v241_v10 = vrot.slane (!%p552_p6), %v227_v6, %v233_v7 }
  0x68   : > { %v250_v11 = vrot.slane %v234_v8, %v233_v7  ;;  %v242_v12 = vcombine.high %v234_v8, %v234_v8  ;;  %v257_v13 = vrot.slane %v241_v10, %v233_v7  ;;  %v243_v14 = vcombine.high %v241_v10, %v241_v10 }
  0x6a   : > { %v279_v15 = vrot.slane %v250_v11, %v278_v9  ;;  %v264_v16 = vrot.slane %v242_v12, %v233_v7  ;;  %v272_v17 = vcombine.high %v250_v11, %v250_v11  ;;  %v295_v18 = vrot.slane %v257_v13, %v278_v9 }
  0x6b   : > { %v271_v19 = vrot.slane %v243_v14, %v233_v7  ;;  %v273_v20 = vcombine.high %v257_v13, %v257_v13 }
  0x6c   : > { %317 = vst.msk [vmem:[%s960_s30] sm:$0xff] %vm316_vm0, %v279_v15  ;;  %318 = vst.msk [vmem:[%s960_s30 + $0x8] sm:$0xff] %vm316_vm0, %v279_v15  ;;  %v283_v21 = vrot.slane %v264_v16, %v278_v9  ;;  %v287_v22 = vrot.slane %v272_v17, %v278_v9  ;;  %v274_v23 = vcombine.high %v264_v16, %v264_v16 }
  0x6d   : > { %325 = vst.msk [vmem:[%s960_s30 + $0x40] sm:$0xff] %vm316_vm0, %v295_v18  ;;  %326 = vst.msk [vmem:[%s960_s30 + $0x48] sm:$0xff] %vm316_vm0, %v295_v18  ;;  %v299_v24 = vrot.slane %v271_v19, %v278_v9  ;;  %v303_v25 = vrot.slane %v273_v20, %v278_v9  ;;  %v275_v26 = vcombine.high %v271_v19, %v271_v19 }
  0x6e   : > { %319 = vst.msk [vmem:[%s960_s30 + $0x10] sm:$0xff] %vm316_vm0, %v283_v21  ;;  %320 = vst.msk [vmem:[%s960_s30 + $0x18] sm:$0xff] %vm316_vm0, %v283_v21  ;;  %v291_v27 = vrot.slane %v274_v23, %v278_v9 }
  0x6f   : > { %321 = vst.msk [vmem:[%s960_s30 + $0x20] sm:$0xff] %vm316_vm0, %v287_v22  ;;  %322 = vst.msk [vmem:[%s960_s30 + $0x28] sm:$0xff] %vm316_vm0, %v287_v22  ;;  %v307_v28 = vrot.slane %v275_v26, %v278_v9 }
  0x70   : > { %327 = vst.msk [vmem:[%s960_s30 + $0x50] sm:$0xff] %vm316_vm0, %v299_v24  ;;  %328 = vst.msk [vmem:[%s960_s30 + $0x58] sm:$0xff] %vm316_vm0, %v299_v24 }
  0x71   : > { %329 = vst.msk [vmem:[%s960_s30 + $0x60] sm:$0xff] %vm316_vm0, %v303_v25  ;;  %330 = vst.msk [vmem:[%s960_s30 + $0x68] sm:$0xff] %vm316_vm0, %v303_v25 }
  0x72   : > { %323 = vst.msk [vmem:[%s960_s30 + $0x30] sm:$0xff] %vm316_vm0, %v291_v27  ;;  %324 = vst.msk [vmem:[%s960_s30 + $0x38] sm:$0xff] %vm316_vm0, %v291_v27 }
  0x73   : > { %331 = vst.msk [vmem:[%s960_s30 + $0x70] sm:$0xff] %vm316_vm0, %v307_v28  ;;  %332 = vst.msk [vmem:[%s960_s30 + $0x78] sm:$0xff] %vm316_vm0, %v307_v28 }
  0x74 PF: > { %p553_p3 = scmp.lt.s32.totalorder %s802_s16, 2 }
  0x75   : > { %v338_v29 = vlaneseq (!%p553_p3)  ;;  %v337_v31 = vld [vmem:[%s182_s26] sm:$0xff] (!%p553_p3)  ;;  %vm426_vm1 = vcmask (!%p553_p3), 130048  }
  0x76   : > { %336 = sbr.rel (%p553_p3) target bundleno = 269 (0x10d), region = 44 }
  0x77   : > { %v339_v30 = vshrl.u32 (!%p553_p3), %v338_v29, 7 }
  0x79   : > { %v351_v32 = vsub.s32 (!%p553_p3), 1, %v339_v30  ;;  %v340_v33 = vsub.s32 (!%p553_p3), 0, %v339_v30  ;;  %v362_v36 = vsub.s32 (!%p553_p3), 2, %v339_v30  ;;  %v373_v38 = vsub.s32 (!%p553_p3), 3, %v339_v30 }
  0x7a   : > { %v384_v40 = vsub.s32 (!%p553_p3), 4, %v339_v30  ;;  %v395_v42 = vsub.s32 (!%p553_p3), 5, %v339_v30  ;;  %v406_v44 = vsub.s32 (!%p553_p3), 6, %v339_v30  ;;  %v417_v46 = vsub.s32 (!%p553_p3), 7, %v339_v30 }
  0x7b   : > { %v352_v34 = vrot.slane (!%p553_p3), %v337_v31, %v351_v32  ;;  %v341_v35 = vrot.slane (!%p553_p3), %v337_v31, %v340_v33  ;;  %v363_v37 = vrot.slane (!%p553_p3), %v337_v31, %v362_v36  ;;  %v374_v39 = vrot.slane (!%p553_p3), %v337_v31, %v373_v38 }
  0x7c   : > { %v385_v41 = vrot.slane (!%p553_p3), %v337_v31, %v384_v40  ;;  %v396_v43 = vrot.slane (!%p553_p3), %v337_v31, %v395_v42  ;;  %v407_v45 = vrot.slane (!%p553_p3), %v337_v31, %v406_v44  ;;  %v418_v47 = vrot.slane (!%p553_p3), %v337_v31, %v417_v46 }
  0x7d   : > { %354 = vbcast.lane.b32.xlu1 %v352_v34, 256  ;;  %343 = vbcast.lane.b32.xlu0 %v341_v35, 256 }
  0x81   : > { %358 = vbcast.lane.b32.xlu1 %v352_v34, 264  ;;  %347 = vbcast.lane.b32.xlu0 %v341_v35, 264 }
  0x85   : > { %369 = vbcast.lane.b32.xlu1 %v363_v37, 264  ;;  %365 = vbcast.lane.b32.xlu0 %v363_v37, 256 }
  0x89   : > { %380 = vbcast.lane.b32.xlu1 %v374_v39, 264  ;;  %376 = vbcast.lane.b32.xlu0 %v374_v39, 256 }
  0x8d   : > { %391 = vbcast.lane.b32.xlu1 %v385_v41, 264  ;;  %387 = vbcast.lane.b32.xlu0 %v385_v41, 256 }
  0x91   : > { %402 = vbcast.lane.b32.xlu1 %v396_v43, 264  ;;  %398 = vbcast.lane.b32.xlu0 %v396_v43, 256 }
  0x95   : > { %413 = vbcast.lane.b32.xlu1 %v407_v45, 264  ;;  %409 = vbcast.lane.b32.xlu0 %v407_v45, 256 }
  0x99   : > { %424 = vbcast.lane.b32.xlu1 %v418_v47, 264  ;;  %420 = vbcast.lane.b32.xlu0 %v418_v47, 256 }
  0xef   : > { %v355_v48 = vpop.permute.xlu1 %354  ;;  %v344_v49 = vpop.permute.xlu0 %343 }
  0xf0   : > { %429 = vst.msk [vmem:[%s960_s30 + $0x10] sm:$0xff] %vm426_vm1, %v355_v48  ;;  %427 = vst.msk [vmem:[%s960_s30] sm:$0xff] %vm426_vm1, %v344_v49 }
  0xf3   : > { %v359_v50 = vpop.permute.xlu1 %358  ;;  %v348_v51 = vpop.permute.xlu0 %347 }
  0xf4   : > { %430 = vst.msk [vmem:[%s960_s30 + $0x18] sm:$0xff] %vm426_vm1, %v359_v50  ;;  %428 = vst.msk [vmem:[%s960_s30 + $0x8] sm:$0xff] %vm426_vm1, %v348_v51 }
  0xf7   : > { %v370_v52 = vpop.permute.xlu1 %369  ;;  %v366_v53 = vpop.permute.xlu0 %365 }
  0xf8   : > { %432 = vst.msk [vmem:[%s960_s30 + $0x28] sm:$0xff] %vm426_vm1, %v370_v52  ;;  %431 = vst.msk [vmem:[%s960_s30 + $0x20] sm:$0xff] %vm426_vm1, %v366_v53 }
  0xfb   : > { %v381_v54 = vpop.permute.xlu1 %380  ;;  %v377_v55 = vpop.permute.xlu0 %376 }
  0xfc   : > { %434 = vst.msk [vmem:[%s960_s30 + $0x38] sm:$0xff] %vm426_vm1, %v381_v54  ;;  %433 = vst.msk [vmem:[%s960_s30 + $0x30] sm:$0xff] %vm426_vm1, %v377_v55 }
  0xff   : > { %v392_v56 = vpop.permute.xlu1 %391  ;;  %v388_v57 = vpop.permute.xlu0 %387 }
 0x100   : > { %436 = vst.msk [vmem:[%s960_s30 + $0x48] sm:$0xff] %vm426_vm1, %v392_v56  ;;  %435 = vst.msk [vmem:[%s960_s30 + $0x40] sm:$0xff] %vm426_vm1, %v388_v57 }
 0x103   : > { %v403_v58 = vpop.permute.xlu1 %402  ;;  %v399_v59 = vpop.permute.xlu0 %398 }
 0x104   : > { %438 = vst.msk [vmem:[%s960_s30 + $0x58] sm:$0xff] %vm426_vm1, %v403_v58  ;;  %437 = vst.msk [vmem:[%s960_s30 + $0x50] sm:$0xff] %vm426_vm1, %v399_v59 }
 0x107   : > { %v414_v60 = vpop.permute.xlu1 %413  ;;  %v410_v61 = vpop.permute.xlu0 %409 }
 0x108   : > { %440 = vst.msk [vmem:[%s960_s30 + $0x68] sm:$0xff] %vm426_vm1, %v414_v60  ;;  %439 = vst.msk [vmem:[%s960_s30 + $0x60] sm:$0xff] %vm426_vm1, %v410_v61 }
 0x10b   : > { %v425_v62 = vpop.permute.xlu1 %424  ;;  %v421_v63 = vpop.permute.xlu0 %420 }
 0x10c   : > { %442 = vst.msk [vmem:[%s960_s30 + $0x78] sm:$0xff] %vm426_vm1, %v425_v62  ;;  %441 = vst.msk [vmem:[%s960_s30 + $0x70] sm:$0xff] %vm426_vm1, %v421_v63 }
 0x10d PF: > { %p15_p2 = scmp.ge.s32.totalorder %s805_s17, 6   ;;  %s1073_s9 = smov %s728_s10 }
 0x10e   : > { %s1074_s10 = smov %s732_s11  ;;  %s1075_s11 = smov %s899_s7 }
 0x10f   : > { %s1076_s12 = smov %s740_s13  ;;  %s1077_s13 = smov %s744_s14 }
 0x110   : > { %s1078_s14 = smov %s826_s23  ;;  %s1079_s15 = smov %s805_s17 }
 0x111   :  { %17 = sbr.rel (!%p15_p2) target bundleno = 7 (0x7), region = 89 }
 0x118   :  { %467 = vsyncpa [#allocation3], 1 }
 0x119   :  { %469 = vsyncpa [#allocation3 + $0x1], 1 }
 0x11a   :  { %470 = vsyncpa [#allocation5], 1 }
 0x11b   :  { %472 = vsyncpa [#allocation5 + $0x1], 1 }

</bundles_post_ra>
